<compile_context>
chip_gen: v5e
topology: v5e:2x2
jax: 0.10.0
libtpu: 0.0.40
codegen_flags: <defaults>
</compile_context>

<pallas_src>
import math

import numpy as np
import jax
import jax.numpy as jnp
from jax import lax
from jax.experimental import pallas as pl
from jax.experimental.pallas import tpu as pltpu

# ---- module hyper-parameters (small, consistent with the PyTorch module) ----
FEATURE_DIMS = {"image": 24, "text": 40, "audio": 8}   # Dict[str, int]
MODALITIES = tuple(FEATURE_DIMS.keys())                # fixed, explicit modality order
NUM_MODALITIES = len(MODALITIES)
D_TOTAL = sum(FEATURE_DIMS.values())                   # 72
D_AUG = D_TOTAL + NUM_MODALITIES                       # 75: features + one-hot bias-selector cols
ATTENTION_DIM = 32
NUM_HEADS = 4
HEAD_DIM = ATTENTION_DIM // NUM_HEADS
OUTPUT_DIM = 16
BATCH = 2

_VMEM = pl.BlockSpec(memory_space=pltpu.MemorySpace.VMEM)


def _round8(n):
    return ((n + 7) // 8) * 8


def _layout(batch):
    """Row offsets of every constant inside the single (ROWS, 32) parameter slab (8-aligned)."""
    bm = batch * NUM_MODALITIES
    hbm = NUM_HEADS * bm
    blocks = (("wq", D_AUG), ("wk", D_AUG), ("wv", D_AUG),
              ("hmask", hbm), ("bias", hbm), ("avg", batch),
              ("wt", ATTENTION_DIM), ("bt", 1))
    off, r = {}, 0
    for name, rows in blocks:
        off[name] = r
        r += _round8(rows)
    off["rows"] = r
    return off


# ----------------------------- Pallas kernel ----------------------------------
def _make_kernel(batch):
    bm = batch * NUM_MODALITIES           # tokens = (batch, modality) pairs
    hbm = NUM_HEADS * bm                  # head-tiled token rows
    off = _layout(batch)
    A, OUT = ATTENTION_DIM, OUTPUT_DIM

    def kernel(x_ref, p_ref, o_ref):
        xb = x_ref[...]                                          # (H*BM, D_AUG): x_aug tiled per head
        xs = x_ref[pl.ds(0, bm), pl.ds(0, D_AUG)]                # (BM, D_AUG): rows 0..BM-1 == x_aug

        wq = p_ref[pl.ds(off["wq"], D_AUG), pl.ds(0, A)]         # modality-proj + bias + scale folded
        wk = p_ref[pl.ds(off["wk"], D_AUG), pl.ds(0, A)]
        wv = p_ref[pl.ds(off["wv"], D_AUG), pl.ds(0, A)]
        hm = p_ref[pl.ds(off["hmask"], hbm), pl.ds(0, A)]        # per-head lane masks (row h*BM+i)

        # Q for all heads in one matmul (head h lives in rows [h*BM,(h+1)*BM) with only its lanes
        # nonzero); K/V only need the un-tiled BM rows.
        q_big = jnp.dot(xb, wq, preferred_element_type=jnp.float32) * hm        # (H*BM, A)
        k = jnp.dot(xs, wk, preferred_element_type=jnp.float32)                 # (BM, A)
        v = jnp.dot(xs, wv, preferred_element_type=jnp.float32)                 # (BM, A)

        # All-head scores in one MXU push; additive -1e9 bias blocks cross-batch attention.
        s = lax.dot_general(q_big, k, (((1,), (1,)), ((), ())),
                            preferred_element_type=jnp.float32)                 # (H*BM, BM)
        s = s + p_ref[pl.ds(off["bias"], hbm), pl.ds(0, bm)]
        s = s - jnp.max(s, axis=-1, keepdims=True)               # exact per-(head, query) max
        e = jnp.exp(s)
        p = e * pl.reciprocal(jnp.sum(e, axis=-1, keepdims=True), approx=True)

        # All-head context; the lane mask puts head h back into its lanes, and the sum over head
        # blocks is folded into the averaging matmul (avg_big is tiled over heads).
        c = jnp.dot(p, v, preferred_element_type=jnp.float32) * hm              # (H*BM, A)
        fused = jnp.dot(p_ref[pl.ds(off["avg"], batch), pl.ds(0, hbm)], c,
                        preferred_element_type=jnp.float32)                     # (B, A)

        # Folded output tail: (wo @ wout) and (bo @ wout + bout) are host-side constants.
        out = jnp.dot(fused, p_ref[pl.ds(off["wt"], A), pl.ds(0, OUT)],
                      preferred_element_type=jnp.float32)
        out = out + p_ref[pl.ds(off["bt"], 1), pl.ds(0, OUT)]
        o_ref[...] = out.astype(o_ref.dtype)

    return kernel


# ------------------------------- host-side packing ------------------------------
def pack_params(params, batch=BATCH):
    """One-time host-side folding of all weights/masks into a single (ROWS, 32) f32 slab."""
    bm = batch * NUM_MODALITIES
    hbm = NUM_HEADS * bm
    assert hbm <= ATTENTION_DIM and bm <= ATTENTION_DIM, "slab lanes too narrow for this batch"
    off = _layout(batch)
    scale = 1.0 / math.sqrt(HEAD_DIM)

    w_stack = np.concatenate([np.asarray(params["proj"][m][0]) for m in MODALITIES], axis=0)  # (72, A)
    b_mod = np.concatenate([np.asarray(params["proj"][m][1]) for m in MODALITIES], axis=0)    # (M, A)

    def fold(w, b, s=1.0):
        w, b = np.asarray(w), np.asarray(b)
        # Rows [0,72): modality-projection folded through w; rows [72,75): per-modality folded bias,
        # selected by the one-hot modality columns of x_aug.
        return (np.concatenate([w_stack @ w, b_mod @ w + b], axis=0) * s).astype(np.float32)  # (D_AUG, A)

    wq_aug = fold(params["wq"], params["bq"], scale)     # 1/sqrt(head_dim) folded into Q only
    wk_aug = fold(params["wk"], params["bk"])
    wv_aug = fold(params["wv"], params["bv"])
    w_tail = np.asarray(params["wo"]) @ np.asarray(params["wout"])                            # (A, OUT)
    b_tail = np.asarray(params["bo"]) @ np.asarray(params["wout"]) + np.asarray(params["bout"])

    batch_ids = np.repeat(np.arange(batch), NUM_MODALITIES)                                   # (BM,)
    attn_bias = np.where(batch_ids[:, None] == batch_ids[None, :], 0.0, -1e9).astype(np.float32)
    head_ids = np.arange(ATTENTION_DIM) // HEAD_DIM
    hmask = (np.arange(NUM_HEADS)[:, None] == head_ids[None, :]).astype(np.float32)          # (H, A)

    hmask_big = np.repeat(hmask, bm, axis=0)             # (H*BM, A): row h*BM+i -> head-h lane mask
    bias_big = np.tile(attn_bias, (NUM_HEADS, 1))        # (H*BM, BM)
    avg = (np.arange(batch)[:, None] == batch_ids[None, :]).astype(np.float32) / NUM_MODALITIES
    avg_big = np.tile(avg, (1, NUM_HEADS))               # (B, H*BM): modality mean + head-block sum

    slab = np.zeros((off["rows"], ATTENTION_DIM), np.float32)
    slab[off["wq"]:off["wq"] + D_AUG, :] = wq_aug
    slab[off["wk"]:off["wk"] + D_AUG, :] = wk_aug
    slab[off["wv"]:off["wv"] + D_AUG, :] = wv_aug
    slab[off["hmask"]:off["hmask"] + hbm, :] = hmask_big
    slab[off["bias"]:off["bias"] + hbm, :bm] = bias_big
    slab[off["avg"]:off["avg"] + batch, :hbm] = avg_big
    slab[off["wt"]:off["wt"] + ATTENTION_DIM, :OUTPUT_DIM] = w_tail
    slab[off["bt"]:off["bt"] + 1, :OUTPUT_DIM] = b_tail
    return jnp.asarray(slab)


def attention_fusion(modality_features, slab):
    """Full forward pass of AttentionFusion -> (B, OUTPUT_DIM); one pallas_call, two inputs."""
    B = next(iter(modality_features.values())).shape[0]

    # Row (b*M + m): modality m's features in its column slot, zeros elsewhere, plus a one-hot
    # modality indicator in the last M columns (selects the folded per-modality bias rows).
    eye = np.eye(NUM_MODALITIES, dtype=np.float32)
    rows, col = [], 0
    for mi, m in enumerate(MODALITIES):
        d = FEATURE_DIMS[m]
        feat = modality_features[m]
        block = jnp.pad(feat, ((0, 0), (col, D_TOTAL - col - d)))            # (B, 72)
        ind = jnp.broadcast_to(jnp.asarray(eye[mi]), (B, NUM_MODALITIES))    # (B, M)
        rows.append(jnp.concatenate([block, ind], axis=1))                   # (B, D_AUG)
        col += d
    x_aug = jnp.stack(rows, axis=1).reshape(B * NUM_MODALITIES, D_AUG)       # (BM, D_AUG)
    x_big = jnp.tile(x_aug, (NUM_HEADS, 1))                                  # (H*BM, D_AUG)

    return pl.pallas_call(
        _make_kernel(B),
        out_shape=jax.ShapeDtypeStruct((B, OUTPUT_DIM), jnp.float32),
        in_specs=[_VMEM, _VMEM],
        out_specs=_VMEM,
    )(x_big, slab)


# ----------------------------- reference (pure JAX) ----------------------------
def reference(modality_features, params):
    projs = []
    for m in MODALITIES:
        w, b = params["proj"][m]
        projs.append((modality_features[m] @ w + b)[:, None, :])
    seq = jnp.concatenate(projs, axis=1)                             # (B, M, A)
    B, M, A = seq.shape
    q = seq @ params["wq"] + params["bq"]
    k = seq @ params["wk"] + params["bk"]
    v = seq @ params["wv"] + params["bv"]
    qh = q.reshape(B, M, NUM_HEADS, HEAD_DIM).transpose(0, 2, 1, 3)
    kh = k.reshape(B, M, NUM_HEADS, HEAD_DIM).transpose(0, 2, 1, 3)
    vh = v.reshape(B, M, NUM_HEADS, HEAD_DIM).transpose(0, 2, 1, 3)
    s = jnp.einsum("bhqd,bhkd->bhqk", qh, kh) / math.sqrt(HEAD_DIM)
    p = jax.nn.softmax(s, axis=-1)
    ctx = jnp.einsum("bhqk,bhkd->bhqd", p, vh).transpose(0, 2, 1, 3).reshape(B, M, A)
    attn_out = ctx @ params["wo"] + params["bo"]
    fused = attn_out.mean(axis=1)
    return fused @ params["wout"] + params["bout"]


# ----------------------------- parameter init ----------------------------------
def init_params(key):
    params = {"proj": {}}
    n_keys = 2 * NUM_MODALITIES + 10
    keys = jax.random.split(key, n_keys)
    ki = 0

    def nrm(shape, scale=0.1):
        nonlocal ki
        k = keys[ki]
        ki += 1
        return scale * jax.random.normal(k, shape, dtype=jnp.float32)

    for m in MODALITIES:
        dim = FEATURE_DIMS[m]
        params["proj"][m] = (nrm((dim, ATTENTION_DIM)), nrm((1, ATTENTION_DIM)))
    params["wq"] = nrm((ATTENTION_DIM, ATTENTION_DIM))
    params["wk"] = nrm((ATTENTION_DIM, ATTENTION_DIM))
    params["wv"] = nrm((ATTENTION_DIM, ATTENTION_DIM))
    params["bq"] = nrm((1, ATTENTION_DIM))
    params["bk"] = nrm((1, ATTENTION_DIM))
    params["bv"] = nrm((1, ATTENTION_DIM))
    params["wo"] = nrm((ATTENTION_DIM, ATTENTION_DIM))
    params["bo"] = nrm((1, ATTENTION_DIM))
    params["wout"] = nrm((ATTENTION_DIM, OUTPUT_DIM))
    params["bout"] = nrm((1, OUTPUT_DIM))
    return params


# ---------------------------------- main ---------------------------------------
if __name__ == "__main__":
    key = jax.random.PRNGKey(0)
    pkey, *fkeys = jax.random.split(key, 1 + NUM_MODALITIES)
    params = init_params(pkey)
    slab = pack_params(params, BATCH)

    modality_features = {
        m: jax.random.normal(fk, (BATCH, FEATURE_DIMS[m]), dtype=jnp.float32)
        for m, fk in zip(MODALITIES, fkeys)
    }

    fwd = jax.jit(attention_fusion)
    out = jax.block_until_ready(fwd(modality_features, slab))
    assert out.shape == (BATCH, OUTPUT_DIM), out.shape

    ref = reference(modality_features, params)
    err = float(jnp.max(jnp.abs(out - ref)))
    # 1e-3 tolerance: approx reciprocal (EUP) in the softmax denominator vs exact divide in ref.
    assert jnp.allclose(out, ref, atol=1e-3, rtol=1e-3), ("mismatch vs reference", err)

    print("KERNEL_OK")
</pallas_src>

<mosaic_0001>
module attributes {stable_mosaic.version = 11 : i64} {
  func.func @kernel(%arg0: memref<24x75xf32, #tpu.memory_space<vmem>>, %arg1: memref<336x32xf32, #tpu.memory_space<vmem>>, %arg2: memref<2x16xf32, #tpu.memory_space<vmem>>) attributes {dimension_semantics = [], scalar_prefetch = 0 : i64, scratch_operands = 0 : i64, tpu.core_type = #tpu.core_type<tc>} {
    %c0 = arith.constant 0 : index
    %c0_0 = arith.constant 0 : index
    %0 = vector.load %arg0[%c0, %c0_0] : memref<24x75xf32, #tpu.memory_space<vmem>>, vector<24x75xf32>
    %c0_1 = arith.constant 0 : index
    %c0_2 = arith.constant 0 : index
    %1 = vector.load %arg0[%c0_1, %c0_2] : memref<24x75xf32, #tpu.memory_space<vmem>>, vector<6x75xf32>
    %c0_3 = arith.constant 0 : index
    %c0_4 = arith.constant 0 : index
    %2 = vector.load %arg1[%c0_3, %c0_4] : memref<336x32xf32, #tpu.memory_space<vmem>>, vector<75x32xf32>
    %c80 = arith.constant 80 : index
    %c0_5 = arith.constant 0 : index
    %3 = vector.load %arg1[%c80, %c0_5] : memref<336x32xf32, #tpu.memory_space<vmem>>, vector<75x32xf32>
    %c160 = arith.constant 160 : index
    %c0_6 = arith.constant 0 : index
    %4 = vector.load %arg1[%c160, %c0_6] : memref<336x32xf32, #tpu.memory_space<vmem>>, vector<75x32xf32>
    %c240 = arith.constant 240 : index
    %c0_7 = arith.constant 0 : index
    %5 = vector.load %arg1[%c240, %c0_7] : memref<336x32xf32, #tpu.memory_space<vmem>>, vector<24x32xf32>
    %cst = arith.constant dense<0.000000e+00> : vector<24x32xf32>
    %6 = tpu.matmul %0, %2, %cst {dimension_numbers = #tpu.dot_dimension_numbers<[1], [0], [0], [1], [0, 0, 1, 1], [], []>} : vector<24x75xf32>, vector<75x32xf32>, vector<24x32xf32> -> vector<24x32xf32>
    %7 = arith.mulf %6, %5 : vector<24x32xf32>
    %cst_8 = arith.constant dense<0.000000e+00> : vector<6x32xf32>
    %8 = tpu.matmul %1, %3, %cst_8 {dimension_numbers = #tpu.dot_dimension_numbers<[1], [0], [0], [1], [0, 0, 1, 1], [], []>} : vector<6x75xf32>, vector<75x32xf32>, vector<6x32xf32> -> vector<6x32xf32>
    %cst_9 = arith.constant dense<0.000000e+00> : vector<6x32xf32>
    %9 = tpu.matmul %1, %4, %cst_9 {dimension_numbers = #tpu.dot_dimension_numbers<[1], [0], [0], [1], [0, 0, 1, 1], [], []>} : vector<6x75xf32>, vector<75x32xf32>, vector<6x32xf32> -> vector<6x32xf32>
    %cst_10 = arith.constant dense<0.000000e+00> : vector<24x6xf32>
    %10 = tpu.matmul %7, %8, %cst_10 {dimension_numbers = #tpu.dot_dimension_numbers<[1], [1], [0], [0], [0, 0, 1, 0], [], []>} : vector<24x32xf32>, vector<6x32xf32>, vector<24x6xf32> -> vector<24x6xf32>
    %c264 = arith.constant 264 : index
    %c0_11 = arith.constant 0 : index
    %11 = vector.load %arg1[%c264, %c0_11] : memref<336x32xf32, #tpu.memory_space<vmem>>, vector<24x6xf32>
    %12 = arith.addf %10, %11 : vector<24x6xf32>
    %cst_12 = arith.constant dense<0xFF800000> : vector<24xf32>
    %13 = vector.multi_reduction <maximumf>, %12, %cst_12 [1] : vector<24x6xf32> to vector<24xf32>
    %14 = vector.shape_cast %13 : vector<24xf32> to vector<24x1xf32>
    %15 = vector.broadcast %14 : vector<24x1xf32> to vector<24x6xf32>
    %16 = arith.subf %12, %15 : vector<24x6xf32>
    %17 = math.exp %16 : vector<24x6xf32>
    %cst_13 = arith.constant dense<0.000000e+00> : vector<24xf32>
    %18 = vector.multi_reduction <add>, %17, %cst_13 [1] : vector<24x6xf32> to vector<24xf32>
    %19 = vector.shape_cast %18 : vector<24xf32> to vector<24x1xf32>
    %20 = tpu.reciprocal %19 {approx = true} : vector<24x1xf32> -> vector<24x1xf32>
    %21 = vector.broadcast %20 : vector<24x1xf32> to vector<24x6xf32>
    %22 = arith.mulf %17, %21 : vector<24x6xf32>
    %cst_14 = arith.constant dense<0.000000e+00> : vector<24x32xf32>
    %23 = tpu.matmul %22, %9, %cst_14 {dimension_numbers = #tpu.dot_dimension_numbers<[1], [0], [0], [1], [0, 0, 1, 1], [], []>} : vector<24x6xf32>, vector<6x32xf32>, vector<24x32xf32> -> vector<24x32xf32>
    %24 = arith.mulf %23, %5 : vector<24x32xf32>
    %c288 = arith.constant 288 : index
    %c0_15 = arith.constant 0 : index
    %25 = vector.load %arg1[%c288, %c0_15] : memref<336x32xf32, #tpu.memory_space<vmem>>, vector<2x24xf32>
    %cst_16 = arith.constant dense<0.000000e+00> : vector<2x32xf32>
    %26 = tpu.matmul %25, %24, %cst_16 {dimension_numbers = #tpu.dot_dimension_numbers<[1], [0], [0], [1], [0, 0, 1, 1], [], []>} : vector<2x24xf32>, vector<24x32xf32>, vector<2x32xf32> -> vector<2x32xf32>
    %c296 = arith.constant 296 : index
    %c0_17 = arith.constant 0 : index
    %27 = vector.load %arg1[%c296, %c0_17] : memref<336x32xf32, #tpu.memory_space<vmem>>, vector<32x16xf32>
    %cst_18 = arith.constant dense<0.000000e+00> : vector<2x16xf32>
    %28 = tpu.matmul %26, %27, %cst_18 {dimension_numbers = #tpu.dot_dimension_numbers<[1], [0], [0], [1], [0, 0, 1, 1], [], []>} : vector<2x32xf32>, vector<32x16xf32>, vector<2x16xf32> -> vector<2x16xf32>
    %c328 = arith.constant 328 : index
    %c0_19 = arith.constant 0 : index
    %29 = vector.load %arg1[%c328, %c0_19] : memref<336x32xf32, #tpu.memory_space<vmem>>, vector<1x16xf32>
    %30 = vector.broadcast %29 : vector<1x16xf32> to vector<2x16xf32>
    %31 = arith.addf %28, %30 : vector<2x16xf32>
    %c0_20 = arith.constant 0 : index
    %c0_21 = arith.constant 0 : index
    %32 = vector.load %arg2[%c0_20, %c0_21] : memref<2x16xf32, #tpu.memory_space<vmem>>, vector<2x16xf32>
    tpu.vector_store %arg2[%c0_20, %c0_21], %31 {strides = array<i32>} : memref<2x16xf32, #tpu.memory_space<vmem>>, vector<2x16xf32>,
    return
  }
}

</mosaic_0001>

<bundles_post_ra>
// kernel: tile.7
= control target key start
LH: loop header
LB: loop body
LE: loop exit
PB: predicated region body
PF: predicated region fallthrough
CT: control target
= control target key end

     0   :  { %vm3_vm0 = vcmask 613376   ;;  %s60_s0 = inlined_call_operand.vmem [shape: f32[4,6,75], index: 0, kind: input, shape index: {}]   ;;  %s61_s1 = inlined_call_operand.vmem [shape: f32[24,75], index: 1, kind: output, shape index: {}]  }
   0x1   :  { %v2_v0 = vld [vmem:[%s60_s0] sm:$0x3f]   ;;  %v20_v1 = vld [vmem:[%s60_s0 + $0x8] sm:$0x3f]   ;;  %v22_v2 = vld [vmem:[%s60_s0 + $0x10] sm:$0x3f]  }
   0x2   :  { %4 = vst.msk [vmem:[%s61_s1] sm:$0x3f] %vm3_vm0, %v2_v0   ;;  %v24_v3 = vld [vmem:[%s60_s0 + $0x18] sm:$0x3f]  }
   0x3   :  { %21 = vst.msk [vmem:[%s61_s1 + $0x6] sm:$0x3f] %vm3_vm0, %v20_v1  }
   0x4   :  { %23 = vst.msk [vmem:[%s61_s1 + $0xc] sm:$0x3f] %vm3_vm0, %v22_v2  }
   0x5   :  { %25 = vst.msk [vmem:[%s61_s1 + $0x12] sm:$0x3f] %vm3_vm0, %v24_v3  }

</bundles_post_ra>
